<compile_context>
chip_gen: v7x
topology: tpu7x:2x2x1
jax: 0.10.0
libtpu: 0.0.40
codegen_flags: <defaults>
</compile_context>

<pallas_src>
import functools

import jax
import jax.numpy as jnp
from jax.experimental import pallas as pl
from jax.experimental.pallas import tpu as pltpu


def _round_up(v, m):
    return ((v + m - 1) // m) * m


def _single_layer_kernel(x_ref, gamma_ref, beta_ref, w_ref, b_ref, masks_ref,
                         o_ref, xflat_ref, im2col_ref, *,
                         eps, W, HW, B, G0, Qr, count, mxu_dtype):
    # x_ref:      (N, Cin, H*W)        input, spatially flattened
    # gamma_ref:  (Cin, 1)             BN weight
    # beta_ref:   (Cin, 1)             BN bias
    # w_ref:      (Cout, 9*Cin)        im2col conv weights, col = t*Cin + c, t = dh*3+dw
    # b_ref:      (Cout, 1)            conv bias
    # masks_ref:  (3, Qpad)            row0: data mask, row1: w!=0, row2: w!=W-1
    # o_ref:      (N, Cin+Cout, H*W)   concat(x, conv(relu(bn(x))))
    # xflat_ref:  (Cin, Qpad)          VMEM scratch: wide-frame activations
    # im2col_ref: (9*Cin, Qr)          VMEM scratch: stacked shifted taps
    N, C, _ = x_ref.shape
    Cout = b_ref.shape[0]

    # ---- 1) Scatter raw x into the zeroed wide-frame scratch ---------------
    # Image n occupies columns [G0 + n*B, G0 + n*B + HW); all other columns
    # are zero guards so any conv tap falling off an image edge reads 0.
    # TODO(synk): at real sizes zero only the guard columns, not the buffer.
    xflat_ref[...] = jnp.zeros(xflat_ref.shape, xflat_ref.dtype)
    for n in range(N):                     # one lane-aligned store per image
        base = G0 + n * B
        xflat_ref[:, base:base + HW] = x_ref[n].astype(jnp.float32)

    # ---- 2) BN batch statistics (biased) as lane-dense reductions ----------
    xp = xflat_ref[...]                                      # (C, Qpad) f32
    ssum = jnp.sum(xp, axis=1, keepdims=True)                # guards add 0
    sqsum = jnp.sum(xp * xp, axis=1, keepdims=True)
    mean = ssum / count
    var = jnp.maximum(sqsum / count - mean * mean, 0.0)      # clamp negatives
    scale = gamma_ref[...] * jax.lax.rsqrt(var + eps)        # (C, 1)
    shift = beta_ref[...] - mean * scale                     # (C, 1)

    # ---- 3) BN + ReLU over the whole scratch; re-zero guards via mask ------
    dmask = masks_ref[0:1, :]                                # (1, Qpad)
    xflat_ref[...] = jnp.maximum(xp * scale + shift, 0.0) * dmask

    # ---- 4) im2col: stack 9 shifted taps, one (Cout,9C)x(9C,Qr) matmul -----
    lmask = masks_ref[1:2, G0:G0 + Qr]     # kill left-neighbor wrap (w == 0)
    rmask = masks_ref[2:3, G0:G0 + Qr]     # kill right-neighbor wrap (w == W-1)
    for dh in range(3):
        for dw in range(3):
            t = dh * 3 + dw
            off = (dh - 1) * W + (dw - 1)
            tap = xflat_ref[:, G0 + off:G0 + off + Qr]       # (C, Qr)
            if dw == 0:
                tap = tap * lmask
            elif dw == 2:
                tap = tap * rmask
            im2col_ref[t * C:(t + 1) * C, :] = tap.astype(im2col_ref.dtype)

    acc = jnp.dot(w_ref[...].astype(mxu_dtype), im2col_ref[...],
                  preferred_element_type=jnp.float32)        # (Cout, Qr)
    acc = (acc + b_ref[...]).astype(o_ref.dtype)

    # ---- 5) Concatenated output: x pass-through + one store per image ------
    # TODO(synk): for a full dense block, alias the output buffer via
    # input_output_aliases and write only the Cout new channels here.
    o_ref[:, 0:C, :] = x_ref[...].astype(o_ref.dtype)
    for n in range(N):
        o_ref[n, C:C + Cout, :] = acc[:, n * B:n * B + HW]


def single_layer_forward(x, gamma, beta, conv_w_oihw, conv_b, eps=1e-5,
                         mxu_dtype=jnp.float32):
    """Exact SingleLayer forward (training-mode BatchNorm batch statistics).

    Set mxu_dtype=jnp.bfloat16 on v6e/v7x for MXU-native operands (f32 acc);
    default f32 keeps tight numerical agreement with the f32 reference.
    """
    N, C, H, W = x.shape
    Cout = conv_w_oihw.shape[0]
    HW = H * W
    G0 = 128                                   # zero guard before image 0
    assert W + 1 <= G0, "guard must cover one conv row shift"
    B = _round_up(HW, 128) + 128               # per-image stride (128-col guard)
    Qr = _round_up((N - 1) * B + HW, 128)      # lane-dense conv output width
    Qpad = _round_up(G0 + Qr + W + 1, 128)     # scratch columns (tap headroom)
    count = float(N * HW)

    # Free (metadata-only) spatial flatten; no extra HBM pass over x.
    x2 = x.reshape(N, C, HW)

    # Tiny parameter reshapes (im2col weight layout: col = (dh*3+dw)*C + c).
    w_mat = jnp.transpose(conv_w_oihw, (2, 3, 1, 0)).reshape(9 * C, Cout).T
    w_mat = w_mat.astype(mxu_dtype)
    gamma2 = gamma.reshape(C, 1).astype(jnp.float32)
    beta2 = beta.reshape(C, 1).astype(jnp.float32)
    bias2 = conv_b.reshape(Cout, 1).astype(jnp.float32)

    # Column masks over the wide-frame scratch (tiny, built once).
    cols = jnp.arange(Qpad, dtype=jnp.int32)
    local = cols - G0
    in_img = (local >= 0) & (local < N * B) & ((local % B) < HW)
    w_idx = (local % B) % W
    masks = jnp.stack([in_img.astype(jnp.float32),
                       (w_idx != 0).astype(jnp.float32),
                       (w_idx != W - 1).astype(jnp.float32)], axis=0)

    kernel = functools.partial(_single_layer_kernel, eps=float(eps), W=W,
                               HW=HW, B=B, G0=G0, Qr=Qr, count=count,
                               mxu_dtype=mxu_dtype)
    out = pl.pallas_call(
        kernel,
        out_shape=jax.ShapeDtypeStruct((N, C + Cout, HW), x.dtype),
        grid_spec=pltpu.PrefetchScalarGridSpec(
            num_scalar_prefetch=0,
            grid=(1,),
            in_specs=[
                pl.BlockSpec((N, C, HW), lambda i: (0, 0, 0)),
                pl.BlockSpec((C, 1), lambda i: (0, 0)),
                pl.BlockSpec((C, 1), lambda i: (0, 0)),
                pl.BlockSpec((Cout, 9 * C), lambda i: (0, 0)),
                pl.BlockSpec((Cout, 1), lambda i: (0, 0)),
                pl.BlockSpec((3, Qpad), lambda i: (0, 0)),
            ],
            out_specs=pl.BlockSpec((N, C + Cout, HW), lambda i: (0, 0, 0)),
            scratch_shapes=[pltpu.VMEM((C, Qpad), jnp.float32),
                            pltpu.VMEM((9 * C, Qr), mxu_dtype)],
        ),
        compiler_params=pltpu.CompilerParams(
            dimension_semantics=("arbitrary",)),
    )(x2, gamma2, beta2, w_mat, bias2, masks)
    return out.reshape(N, C + Cout, H, W)


def reference_forward(x, gamma, beta, w_oihw, b, eps=1e-5):
    mean = jnp.mean(x, axis=(0, 2, 3), keepdims=True)
    var = jnp.mean((x - mean) ** 2, axis=(0, 2, 3), keepdims=True)
    xn = (x - mean) / jnp.sqrt(var + eps)
    xn = xn * gamma[None, :, None, None] + beta[None, :, None, None]
    xr = jnp.maximum(xn, 0.0)
    out = jax.lax.conv_general_dilated(
        xr, w_oihw, window_strides=(1, 1), padding=((1, 1), (1, 1)),
        dimension_numbers=('NCHW', 'OIHW', 'NCHW'))
    out = out + b[None, :, None, None]
    return jnp.concatenate([x, out], axis=1)


if __name__ == "__main__":
    N, Cin, H, W = 2, 4, 16, 16
    growth_rate = 8

    key = jax.random.PRNGKey(0)
    kx, kw, kb = jax.random.split(key, 3)

    x = jax.random.normal(kx, (N, Cin, H, W), dtype=jnp.float32)

    # BatchNorm2d default init: gamma = 1, beta = 0.
    gamma = jnp.ones((Cin,), jnp.float32)
    beta = jnp.zeros((Cin,), jnp.float32)

    # Conv2d default init (kaiming-uniform style bound = 1/sqrt(fan_in)).
    fan_in = Cin * 3 * 3
    bound = 1.0 / (fan_in ** 0.5)
    conv_w = jax.random.uniform(kw, (growth_rate, Cin, 3, 3),
                                minval=-bound, maxval=bound, dtype=jnp.float32)
    conv_b = jax.random.uniform(kb, (growth_rate,),
                                minval=-bound, maxval=bound, dtype=jnp.float32)

    out = single_layer_forward(x, gamma, beta, conv_w, conv_b)
    out = jax.block_until_ready(out)

    ref = jax.block_until_ready(reference_forward(x, gamma, beta, conv_w, conv_b))
    assert out.shape == (N, Cin + growth_rate, H, W), out.shape
    assert jnp.allclose(out, ref, atol=1e-4, rtol=1e-4), \
        float(jnp.max(jnp.abs(out - ref)))

    print("KERNEL_OK")
</pallas_src>

<mosaic_0001>
module attributes {stable_mosaic.version = 11 : i64} {
  func.func @_single_layer_kernel(%arg0: i32, %arg1: memref<2x4x256xf32, #tpu.memory_space<vmem>>, %arg2: memref<4x1xf32, #tpu.memory_space<vmem>>, %arg3: memref<4x1xf32, #tpu.memory_space<vmem>>, %arg4: memref<8x36xf32, #tpu.memory_space<vmem>>, %arg5: memref<8x1xf32, #tpu.memory_space<vmem>>, %arg6: memref<3x896xf32, #tpu.memory_space<vmem>>, %arg7: memref<2x12x256xf32, #tpu.memory_space<vmem>>, %arg8: memref<4x896xf32, #tpu.memory_space<vmem>>, %arg9: memref<36x640xf32, #tpu.memory_space<vmem>>) attributes {dimension_semantics = [#tpu.dimension_semantics<arbitrary>], iteration_bounds = array<i64: 1>, scalar_prefetch = 0 : i64, scratch_operands = 2 : i64, tpu.core_type = #tpu.core_type<tc>, window_params = [{pipeline_mode = #tpu.pipeline_mode<synchronous>, transform_indices = @transform_0, window_bounds = array<i64: 2, 4, 256>}, {pipeline_mode = #tpu.pipeline_mode<synchronous>, transform_indices = @transform_1, window_bounds = array<i64: 4, 1>}, {pipeline_mode = #tpu.pipeline_mode<synchronous>, transform_indices = @transform_2, window_bounds = array<i64: 4, 1>}, {pipeline_mode = #tpu.pipeline_mode<synchronous>, transform_indices = @transform_3, window_bounds = array<i64: 8, 36>}, {pipeline_mode = #tpu.pipeline_mode<synchronous>, transform_indices = @transform_4, window_bounds = array<i64: 8, 1>}, {pipeline_mode = #tpu.pipeline_mode<synchronous>, transform_indices = @transform_5, window_bounds = array<i64: 3, 896>}, {pipeline_mode = #tpu.pipeline_mode<synchronous>, transform_indices = @transform_6, window_bounds = array<i64: 2, 12, 256>}]} {
    %cst = arith.constant 0.000000e+00 : f32
    %0 = vector.broadcast %cst : f32 to vector<4x896xf32>
    %c0 = arith.constant 0 : index
    %c0_0 = arith.constant 0 : index
    %1 = vector.load %arg8[%c0, %c0_0] : memref<4x896xf32, #tpu.memory_space<vmem>>, vector<4x896xf32>
    tpu.vector_store %arg8[%c0, %c0_0], %0 {strides = array<i32>} : memref<4x896xf32, #tpu.memory_space<vmem>>, vector<4x896xf32>,
    %c0_1 = arith.constant 0 : index
    %c0_2 = arith.constant 0 : index
    %c0_3 = arith.constant 0 : index
    %2 = vector.load %arg1[%c0_1, %c0_2, %c0_3] : memref<2x4x256xf32, #tpu.memory_space<vmem>>, vector<1x4x256xf32>
    %3 = vector.shape_cast %2 : vector<1x4x256xf32> to vector<4x256xf32>
    %c0_4 = arith.constant 0 : index
    %c128 = arith.constant 128 : index
    %4 = vector.load %arg8[%c0_4, %c128] : memref<4x896xf32, #tpu.memory_space<vmem>>, vector<4x256xf32>
    tpu.vector_store %arg8[%c0_4, %c128], %3 {strides = array<i32>} : memref<4x896xf32, #tpu.memory_space<vmem>>, vector<4x256xf32>,
    %c1 = arith.constant 1 : index
    %c0_5 = arith.constant 0 : index
    %c0_6 = arith.constant 0 : index
    %5 = vector.load %arg1[%c1, %c0_5, %c0_6] : memref<2x4x256xf32, #tpu.memory_space<vmem>>, vector<1x4x256xf32>
    %6 = vector.shape_cast %5 : vector<1x4x256xf32> to vector<4x256xf32>
    %c0_7 = arith.constant 0 : index
    %c512 = arith.constant 512 : index
    %7 = vector.load %arg8[%c0_7, %c512] : memref<4x896xf32, #tpu.memory_space<vmem>>, vector<4x256xf32>
    tpu.vector_store %arg8[%c0_7, %c512], %6 {strides = array<i32>} : memref<4x896xf32, #tpu.memory_space<vmem>>, vector<4x256xf32>,
    %c0_8 = arith.constant 0 : index
    %c0_9 = arith.constant 0 : index
    %8 = vector.load %arg8[%c0_8, %c0_9] : memref<4x896xf32, #tpu.memory_space<vmem>>, vector<4x896xf32>
    %cst_10 = arith.constant dense<0.000000e+00> : vector<4xf32>
    %9 = vector.multi_reduction <add>, %8, %cst_10 [1] : vector<4x896xf32> to vector<4xf32>
    %10 = vector.shape_cast %9 : vector<4xf32> to vector<4x1xf32>
    %11 = arith.mulf %8, %8 : vector<4x896xf32>
    %cst_11 = arith.constant dense<0.000000e+00> : vector<4xf32>
    %12 = vector.multi_reduction <add>, %11, %cst_11 [1] : vector<4x896xf32> to vector<4xf32>
    %13 = vector.shape_cast %12 : vector<4xf32> to vector<4x1xf32>
    %cst_12 = arith.constant 5.120000e+02 : f32
    %14 = vector.broadcast %cst_12 : f32 to vector<4x1xf32>
    %15 = arith.divf %10, %14 : vector<4x1xf32>
    %cst_13 = arith.constant 5.120000e+02 : f32
    %16 = vector.broadcast %cst_13 : f32 to vector<4x1xf32>
    %17 = arith.divf %13, %16 : vector<4x1xf32>
    %18 = arith.mulf %15, %15 : vector<4x1xf32>
    %19 = arith.subf %17, %18 : vector<4x1xf32>
    %cst_14 = arith.constant 0.000000e+00 : f32
    %20 = vector.broadcast %cst_14 : f32 to vector<4x1xf32>
    %21 = arith.maximumf %19, %20 : vector<4x1xf32>
    %c0_15 = arith.constant 0 : index
    %c0_16 = arith.constant 0 : index
    %22 = vector.load %arg2[%c0_15, %c0_16] : memref<4x1xf32, #tpu.memory_space<vmem>>, vector<4x1xf32>
    %cst_17 = arith.constant 9.99999974E-6 : f32
    %23 = vector.broadcast %cst_17 : f32 to vector<4x1xf32>
    %24 = arith.addf %21, %23 : vector<4x1xf32>
    %25 = math.rsqrt %24 : vector<4x1xf32>
    %26 = arith.mulf %22, %25 : vector<4x1xf32>
    %c0_18 = arith.constant 0 : index
    %c0_19 = arith.constant 0 : index
    %27 = vector.load %arg3[%c0_18, %c0_19] : memref<4x1xf32, #tpu.memory_space<vmem>>, vector<4x1xf32>
    %28 = arith.mulf %15, %26 : vector<4x1xf32>
    %29 = arith.subf %27, %28 : vector<4x1xf32>
    %c0_20 = arith.constant 0 : index
    %c0_21 = arith.constant 0 : index
    %30 = vector.load %arg6[%c0_20, %c0_21] : memref<3x896xf32, #tpu.memory_space<vmem>>, vector<1x896xf32>
    %31 = vector.broadcast %26 : vector<4x1xf32> to vector<4x896xf32>
    %32 = arith.mulf %8, %31 : vector<4x896xf32>
    %33 = vector.broadcast %29 : vector<4x1xf32> to vector<4x896xf32>
    %34 = arith.addf %32, %33 : vector<4x896xf32>
    %cst_22 = arith.constant 0.000000e+00 : f32
    %35 = vector.broadcast %cst_22 : f32 to vector<4x896xf32>
    %36 = arith.maximumf %34, %35 : vector<4x896xf32>
    %37 = vector.broadcast %30 : vector<1x896xf32> to vector<4x896xf32>
    %38 = arith.mulf %36, %37 : vector<4x896xf32>
    %c0_23 = arith.constant 0 : index
    %c0_24 = arith.constant 0 : index
    %39 = vector.load %arg8[%c0_23, %c0_24] : memref<4x896xf32, #tpu.memory_space<vmem>>, vector<4x896xf32>
    tpu.vector_store %arg8[%c0_23, %c0_24], %38 {strides = array<i32>} : memref<4x896xf32, #tpu.memory_space<vmem>>, vector<4x896xf32>,
    %c1_25 = arith.constant 1 : index
    %c128_26 = arith.constant 128 : index
    %40 = vector.load %arg6[%c1_25, %c128_26] : memref<3x896xf32, #tpu.memory_space<vmem>>, vector<1x640xf32>
    %c2 = arith.constant 2 : index
    %c128_27 = arith.constant 128 : index
    %41 = vector.load %arg6[%c2, %c128_27] : memref<3x896xf32, #tpu.memory_space<vmem>>, vector<1x640xf32>
    %c0_28 = arith.constant 0 : index
    %c111 = arith.constant 111 : index
    %42 = vector.load %arg8[%c0_28, %c111] : memref<4x896xf32, #tpu.memory_space<vmem>>, vector<4x640xf32>
    %43 = vector.broadcast %40 : vector<1x640xf32> to vector<4x640xf32>
    %44 = arith.mulf %42, %43 : vector<4x640xf32>
    %c0_29 = arith.constant 0 : index
    %c0_30 = arith.constant 0 : index
    %45 = vector.load %arg9[%c0_29, %c0_30] : memref<36x640xf32, #tpu.memory_space<vmem>>, vector<4x640xf32>
    tpu.vector_store %arg9[%c0_29, %c0_30], %44 {strides = array<i32>} : memref<36x640xf32, #tpu.memory_space<vmem>>, vector<4x640xf32>,
    %c0_31 = arith.constant 0 : index
    %c112 = arith.constant 112 : index
    %46 = vector.load %arg8[%c0_31, %c112] : memref<4x896xf32, #tpu.memory_space<vmem>>, vector<4x640xf32>
    %c4 = arith.constant 4 : index
    %c0_32 = arith.constant 0 : index
    %47 = vector.load %arg9[%c4, %c0_32] : memref<36x640xf32, #tpu.memory_space<vmem>>, vector<4x640xf32>
    tpu.vector_store %arg9[%c4, %c0_32], %46 {strides = array<i32>} : memref<36x640xf32, #tpu.memory_space<vmem>>, vector<4x640xf32>,
    %c0_33 = arith.constant 0 : index
    %c113 = arith.constant 113 : index
    %48 = vector.load %arg8[%c0_33, %c113] : memref<4x896xf32, #tpu.memory_space<vmem>>, vector<4x640xf32>
    %49 = vector.broadcast %41 : vector<1x640xf32> to vector<4x640xf32>
    %50 = arith.mulf %48, %49 : vector<4x640xf32>
    %c8 = arith.constant 8 : index
    %c0_34 = arith.constant 0 : index
    %51 = vector.load %arg9[%c8, %c0_34] : memref<36x640xf32, #tpu.memory_space<vmem>>, vector<4x640xf32>
    tpu.vector_store %arg9[%c8, %c0_34], %50 {strides = array<i32>} : memref<36x640xf32, #tpu.memory_space<vmem>>, vector<4x640xf32>,
    %c0_35 = arith.constant 0 : index
    %c127 = arith.constant 127 : index
    %52 = vector.load %arg8[%c0_35, %c127] : memref<4x896xf32, #tpu.memory_space<vmem>>, vector<4x640xf32>
    %53 = vector.broadcast %40 : vector<1x640xf32> to vector<4x640xf32>
    %54 = arith.mulf %52, %53 : vector<4x640xf32>
    %c12 = arith.constant 12 : index
    %c0_36 = arith.constant 0 : index
    %55 = vector.load %arg9[%c12, %c0_36] : memref<36x640xf32, #tpu.memory_space<vmem>>, vector<4x640xf32>
    tpu.vector_store %arg9[%c12, %c0_36], %54 {strides = array<i32>} : memref<36x640xf32, #tpu.memory_space<vmem>>, vector<4x640xf32>,
    %c0_37 = arith.constant 0 : index
    %c128_38 = arith.constant 128 : index
    %56 = vector.load %arg8[%c0_37, %c128_38] : memref<4x896xf32, #tpu.memory_space<vmem>>, vector<4x640xf32>
    %c16 = arith.constant 16 : index
    %c0_39 = arith.constant 0 : index
    %57 = vector.load %arg9[%c16, %c0_39] : memref<36x640xf32, #tpu.memory_space<vmem>>, vector<4x640xf32>
    tpu.vector_store %arg9[%c16, %c0_39], %56 {strides = array<i32>} : memref<36x640xf32, #tpu.memory_space<vmem>>, vector<4x640xf32>,
    %c0_40 = arith.constant 0 : index
    %c129 = arith.constant 129 : index
    %58 = vector.load %arg8[%c0_40, %c129] : memref<4x896xf32, #tpu.memory_space<vmem>>, vector<4x640xf32>
    %59 = vector.broadcast %41 : vector<1x640xf32> to vector<4x640xf32>
    %60 = arith.mulf %58, %59 : vector<4x640xf32>
    %c20 = arith.constant 20 : index
    %c0_41 = arith.constant 0 : index
    %61 = vector.load %arg9[%c20, %c0_41] : memref<36x640xf32, #tpu.memory_space<vmem>>, vector<4x640xf32>
    tpu.vector_store %arg9[%c20, %c0_41], %60 {strides = array<i32>} : memref<36x640xf32, #tpu.memory_space<vmem>>, vector<4x640xf32>,
    %c0_42 = arith.constant 0 : index
    %c143 = arith.constant 143 : index
    %62 = vector.load %arg8[%c0_42, %c143] : memref<4x896xf32, #tpu.memory_space<vmem>>, vector<4x640xf32>
    %63 = vector.broadcast %40 : vector<1x640xf32> to vector<4x640xf32>
    %64 = arith.mulf %62, %63 : vector<4x640xf32>
    %c24 = arith.constant 24 : index
    %c0_43 = arith.constant 0 : index
    %65 = vector.load %arg9[%c24, %c0_43] : memref<36x640xf32, #tpu.memory_space<vmem>>, vector<4x640xf32>
    tpu.vector_store %arg9[%c24, %c0_43], %64 {strides = array<i32>} : memref<36x640xf32, #tpu.memory_space<vmem>>, vector<4x640xf32>,
    %c0_44 = arith.constant 0 : index
    %c144 = arith.constant 144 : index
    %66 = vector.load %arg8[%c0_44, %c144] : memref<4x896xf32, #tpu.memory_space<vmem>>, vector<4x640xf32>
    %c28 = arith.constant 28 : index
    %c0_45 = arith.constant 0 : index
    %67 = vector.load %arg9[%c28, %c0_45] : memref<36x640xf32, #tpu.memory_space<vmem>>, vector<4x640xf32>
    tpu.vector_store %arg9[%c28, %c0_45], %66 {strides = array<i32>} : memref<36x640xf32, #tpu.memory_space<vmem>>, vector<4x640xf32>,
    %c0_46 = arith.constant 0 : index
    %c145 = arith.constant 145 : index
    %68 = vector.load %arg8[%c0_46, %c145] : memref<4x896xf32, #tpu.memory_space<vmem>>, vector<4x640xf32>
    %69 = vector.broadcast %41 : vector<1x640xf32> to vector<4x640xf32>
    %70 = arith.mulf %68, %69 : vector<4x640xf32>
    %c32 = arith.constant 32 : index
    %c0_47 = arith.constant 0 : index
    %71 = vector.load %arg9[%c32, %c0_47] : memref<36x640xf32, #tpu.memory_space<vmem>>, vector<4x640xf32>
    tpu.vector_store %arg9[%c32, %c0_47], %70 {strides = array<i32>} : memref<36x640xf32, #tpu.memory_space<vmem>>, vector<4x640xf32>,
    %c0_48 = arith.constant 0 : index
    %c0_49 = arith.constant 0 : index
    %72 = vector.load %arg4[%c0_48, %c0_49] : memref<8x36xf32, #tpu.memory_space<vmem>>, vector<8x36xf32>
    %c0_50 = arith.constant 0 : index
    %c0_51 = arith.constant 0 : index
    %73 = vector.load %arg9[%c0_50, %c0_51] : memref<36x640xf32, #tpu.memory_space<vmem>>, vector<36x640xf32>
    %cst_52 = arith.constant dense<0.000000e+00> : vector<8x640xf32>
    %74 = tpu.matmul %72, %73, %cst_52 {dimension_numbers = #tpu.dot_dimension_numbers<[1], [0], [0], [1], [0, 0, 1, 1], [], []>} : vector<8x36xf32>, vector<36x640xf32>, vector<8x640xf32> -> vector<8x640xf32>
    %c0_53 = arith.constant 0 : index
    %c0_54 = arith.constant 0 : index
    %75 = vector.load %arg5[%c0_53, %c0_54] : memref<8x1xf32, #tpu.memory_space<vmem>>, vector<8x1xf32>
    %76 = vector.broadcast %75 : vector<8x1xf32> to vector<8x640xf32>
    %77 = arith.addf %74, %76 : vector<8x640xf32>
    %c0_55 = arith.constant 0 : index
    %c0_56 = arith.constant 0 : index
    %c0_57 = arith.constant 0 : index
    %78 = vector.load %arg1[%c0_55, %c0_56, %c0_57] : memref<2x4x256xf32, #tpu.memory_space<vmem>>, vector<2x4x256xf32>
    %c0_58 = arith.constant 0 : index
    %c0_59 = arith.constant 0 : index
    %c0_60 = arith.constant 0 : index
    %79 = vector.load %arg7[%c0_58, %c0_59, %c0_60] : memref<2x12x256xf32, #tpu.memory_space<vmem>>, vector<2x4x256xf32>
    tpu.vector_store %arg7[%c0_58, %c0_59, %c0_60], %78 {strides = array<i32>} : memref<2x12x256xf32, #tpu.memory_space<vmem>>, vector<2x4x256xf32>,
    %80 = vector.extract_strided_slice %77 {offsets = [0, 0], sizes = [8, 256], strides = [1, 1]} : vector<8x640xf32> to vector<8x256xf32>
    %c0_61 = arith.constant 0 : index
    %c4_62 = arith.constant 4 : index
    %c0_63 = arith.constant 0 : index
    %81 = vector.load %arg7[%c0_61, %c4_62, %c0_63] : memref<2x12x256xf32, #tpu.memory_space<vmem>>, vector<1x8x256xf32>
    %82 = vector.shape_cast %81 : vector<1x8x256xf32> to vector<8x256xf32>
    %83 = vector.shape_cast %80 : vector<8x256xf32> to vector<1x8x256xf32>
    tpu.vector_store %arg7[%c0_61, %c4_62, %c0_63], %83 {strides = array<i32>} : memref<2x12x256xf32, #tpu.memory_space<vmem>>, vector<1x8x256xf32>,
    %84 = vector.extract_strided_slice %77 {offsets = [0, 384], sizes = [8, 256], strides = [1, 1]} : vector<8x640xf32> to vector<8x256xf32>
    %c1_64 = arith.constant 1 : index
    %c4_65 = arith.constant 4 : index
    %c0_66 = arith.constant 0 : index
    %85 = vector.load %arg7[%c1_64, %c4_65, %c0_66] : memref<2x12x256xf32, #tpu.memory_space<vmem>>, vector<1x8x256xf32>
    %86 = vector.shape_cast %85 : vector<1x8x256xf32> to vector<8x256xf32>
    %87 = vector.shape_cast %84 : vector<8x256xf32> to vector<1x8x256xf32>
    tpu.vector_store %arg7[%c1_64, %c4_65, %c0_66], %87 {strides = array<i32>} : memref<2x12x256xf32, #tpu.memory_space<vmem>>, vector<1x8x256xf32>,
    return
  }
  func.func @transform_0(%arg0: i32) -> (i32, i32, i32) {
    %c0_i32 = arith.constant 0 : i32
    %c0_i32_0 = arith.constant 0 : i32
    %c0_i32_1 = arith.constant 0 : i32
    %c0_i32_2 = arith.constant 0 : i32
    return %c0_i32, %c0_i32_0, %c0_i32_1 : i32, i32, i32
  }
  func.func @transform_1(%arg0: i32) -> (i32, i32) {
    %c0_i32 = arith.constant 0 : i32
    %c0_i32_0 = arith.constant 0 : i32
    %c0_i32_1 = arith.constant 0 : i32
    return %c0_i32, %c0_i32_0 : i32, i32
  }
  func.func @transform_2(%arg0: i32) -> (i32, i32) {
    %c0_i32 = arith.constant 0 : i32
    %c0_i32_0 = arith.constant 0 : i32
    %c0_i32_1 = arith.constant 0 : i32
    return %c0_i32, %c0_i32_0 : i32, i32
  }
  func.func @transform_3(%arg0: i32) -> (i32, i32) {
    %c0_i32 = arith.constant 0 : i32
    %c0_i32_0 = arith.constant 0 : i32
    %c0_i32_1 = arith.constant 0 : i32
    return %c0_i32, %c0_i32_0 : i32, i32
  }
  func.func @transform_4(%arg0: i32) -> (i32, i32) {
    %c0_i32 = arith.constant 0 : i32
    %c0_i32_0 = arith.constant 0 : i32
    %c0_i32_1 = arith.constant 0 : i32
    return %c0_i32, %c0_i32_0 : i32, i32
  }
  func.func @transform_5(%arg0: i32) -> (i32, i32) {
    %c0_i32 = arith.constant 0 : i32
    %c0_i32_0 = arith.constant 0 : i32
    %c0_i32_1 = arith.constant 0 : i32
    return %c0_i32, %c0_i32_0 : i32, i32
  }
  func.func @transform_6(%arg0: i32) -> (i32, i32, i32) {
    %c0_i32 = arith.constant 0 : i32
    %c0_i32_0 = arith.constant 0 : i32
    %c0_i32_1 = arith.constant 0 : i32
    %c0_i32_2 = arith.constant 0 : i32
    return %c0_i32, %c0_i32_0, %c0_i32_1 : i32, i32, i32
  }
}

</mosaic_0001>

<bundles_post_ra>
// kernel: tpu_custom_call.1
= control target key start
LH: loop header
LB: loop body
LE: loop exit
PB: predicated region body
PF: predicated region fallthrough
CT: control target
= control target key end

     0   :  { %11 = vsyncpa [#allocation5], 0  ;;  %s1085_s21 = smov [#allocation4]   ;;  %s1639_s0 = inlined_call_operand.hbm [shape: f32[2,4,256], index: 0, kind: input, shape index: {}]   ;;  %s1640_s1 = inlined_call_operand.vmem [shape: f32[4,1], index: 1, kind: input, shape index: {}]   ;;  %s1641_s2 = inlined_call_operand.vmem [shape: f32[4,1], index: 2, kind: input, shape index: {}]   ;;  %s1642_s3 = inlined_call_operand.vmem [shape: f32[8,36], index: 3, kind: input, shape index: {}]   ;;  %s1643_s4 = inlined_call_operand.vmem [shape: f32[8,1], index: 4, kind: input, shape index: {}]   ;;  %s1644_s5 = inlined_call_operand.vmem [shape: f32[3,896], index: 5, kind: input, shape index: {}]   ;;  %s1645_s6 = inlined_call_operand.vmem [shape: f32[2,12,256], index: 6, kind: output, shape index: {}]  }
   0x1   :  { %s17_s22 = sshll.u32 %s1085_s21, 4  ;;  %s1061_s25 = scalar_lea.hbm %s1639_s0, 256  ;;  %s18_s22 = int_to_ptr.vmem [resolvable:$true] %s17_s22 }
   0x2   :  { %p1062_p0 = scmp.ne.s32.totalorder %s1639_s0, %s1061_s25  ;;  %p1065_p1 = scmp.lt.u32.totalorder %s1061_s25, %s1639_s0 }
   0x4   :  { %p1067_p2 = pnand %p1065_p1, %p1062_p0 }
   0x6   :  { %1070 = shalt.err (!%p1067_p2)
}
   0x7   :  { %s1071_s30 = scalar_lea.vmem %s18_s22, 256  ;;  %p1076_p4 = scmp.lt.s32.totalorder %s18_s22, %s18_s22 }
   0x8   :  { %p1072_p3 = scmp.ne.s32.totalorder %s18_s22, %s1071_s30  ;;  %p1077_p5 = scmp.lt.s32.totalorder %s1071_s30, %s1071_s30 }
   0xa   :  { %p1078_p6 = por %p1077_p5, %p1076_p4 }
   0xc   :  { %p1079_p7 = pnand %p1078_p6, %p1072_p3 }
   0xe   :  { %1082 = shalt.err (!%p1079_p7)
}
   0xf   :  { %s1086_s7 = smov 128   ;;  %s1087_s8 = smov 8  }
  0x10   :  { %23 = dma.hbm_to_vmem [thread:$0]  %s1639_s0, 256, %s18_s22, [#allocation5], %s1086_s7, %s1086_s7, %s1087_s8  }
  0x11   :  { %1083 = dma.done.wait [#allocation5], 256  }
  0x12   :  { %1084 = vsyncadd [#allocation5], 4294967040  ;;  %v124_v0 = vlaneseq  ;;  %v1088_v1 = vmov 0.0   ;;  %v939_v6 = vld [vmem:[#allocation4] sm:$0xff]  ;;  %v1164_v7 = vld [vmem:[#allocation4 + $0x8] sm:$0xff]  ;;  %vm59_vm0 = vcmask 1043456  }
  0x13   :  { %37 = vst [vmem:[#allocation2] sm:$0xff] %v1088_v1  ;;  %38 = vst [vmem:[#allocation2 + $0x8] sm:$0xff] %v1088_v1  ;;  %792 = vmatprep.mubr.f32.mxu0 %v1088_v1  ;;  %863 = vmatprep.mubr.f32.mxu1 %v1088_v1  ;;  %v1169_v8 = vld [vmem:[%s1644_s5 + $0x5] ss:$4 sm:$0x1f]  ;;  %v943_v10 = vcombine.high %v939_v6, %v939_v6  ;;  %v944_v11 = vcombine.high %v1164_v7, %v1164_v7  ;;  %s1089_s22 = smov 127  }
  0x14   :  { %40 = vst [vmem:[#allocation2 + $0x18] sm:$0xf] %v1088_v1  ;;  %v1153_v2 = vshrl.u32 %v124_v0, 7  ;;  %947 = vst [vmem:[%s1645_s6] sm:$0xf] %v939_v6  ;;  %s1090_s23 = smov 111   ;;  %v77_v31 = vmul.f32 %v1164_v7, %v1164_v7  ;;  %s1091_s24 = smov 113  }
  0x15   :  { %949 = vst [vmem:[%s1645_s6 + $0x20] sm:$0xf] %v1164_v7  ;;  %42 = vst [vmem:[#allocation2 + $0x4] sm:$0xff] %v939_v6  ;;  %v1198_v15 = vld [vmem:[%s1644_s5 + $0x6] ss:$4 sm:$0x1f] }
  0x16   :  { %v1156_v3 = vsub.s32 2, %v1153_v2  ;;  %v1159_v4 = vsub.s32 3, %v1153_v2  ;;  %v1162_v5 = vsub.s32 0, %v1153_v2  ;;  %v1172_v9 = vsub.s32 1, %v1153_v2  ;;  %948 = vst [vmem:[%s1645_s6 + $0x8] sm:$0xf] %v943_v10 }
  0x17   :  { %950 = vst [vmem:[%s1645_s6 + $0x28] sm:$0xf] %v944_v11  ;;  %v67_v42 = vsel %vm59_vm0, %v1164_v7, 0.0  ;;  %v84_v46 = vcombine.high %v77_v31, %v77_v31  ;;  %v69_v48 = vsel %vm59_vm0, %v944_v11, 0.0  ;;  %v95_v52 = vsel %vm59_vm0, %v77_v31, 0.0  ;;  %s1092_s25 = smov 1  }
  0x18   :  { %v216_v12 = vrot.slane %v1169_v8, %v1156_v3  ;;  %v220_v13 = vrot.slane %v1169_v8, %v1159_v4  ;;  %v208_v14 = vrot.slane %v1169_v8, %v1162_v5  ;;  %v212_v17 = vrot.slane %v1169_v8, %v1172_v9  ;;  %s1093_s26 = smov 15   ;;  %s1095_s27 = smov 17  }
  0x19   :  { %v326_v19 = vrot.slane %v1198_v15, %v1162_v5  ;;  %v330_v20 = vrot.slane %v1198_v15, %v1172_v9  ;;  %v334_v37 = vrot.slane %v1198_v15, %v1156_v3  ;;  %v338_v41 = vrot.slane %v1198_v15, %v1159_v4 }
  0x1a   :  { %v1200_v16 = vcombine.low %v216_v12, %v220_v13  ;;  %v225_v18 = vcombine.low %v208_v14, %v212_v17  ;;  %v97_v57 = vsel %vm59_vm0, %v84_v46, 0.0  ;;  %v1257_v63 = vsub.s32 4, %v1153_v2 }
  0x1b   :  { %v343_v28 = vcombine.low %v326_v19, %v330_v20  ;;  %v1241_v44 = vld [vmem:[#allocation2 + $0x18] sm:$0xf]  ;;  %v344_v53 = vcombine.low %v334_v37, %v338_v41  ;;  %v1094_v10 = vmov 0   ;;  %vm412_vm1 = vcmask 1039360  }
  0x1c   :  { %405 = vrot.lane.b32.xlu1 %v1200_v16, %s1089_s22  ;;  %v1210_v21 = vld [vmem:[#allocation2] sm:$0xff]  ;;  %v1212_v22 = vld [vmem:[#allocation2 + $0x8] sm:$0xff]  ;;  %v78_v51 = vmul.f32 %v1241_v44, %v1241_v44  ;;  %v71_v54 = vsel %vm59_vm0, %v1241_v44, 0.0  ;;  %v224_v0 = vrot.slane %v1169_v8, %v1257_v63  ;;  %v342_v6 = vrot.slane %v1198_v15, %v1257_v63  ;;  %1049 = vset.pattern.permute.xlu0 %v1094_v10 }
  0x1d   :  { %v53_v23 = vcombine.high %v1210_v21, %v1210_v21  ;;  %v54_v24 = vcombine.high %v1212_v22, %v1212_v22  ;;  %v60_v25 = vsel %vm59_vm0, %v1210_v21, 0.0  ;;  %v75_v26 = vmul.f32 %v1210_v21, %v1210_v21  ;;  %1048 = vset.pattern.permute.xlu1 %v1094_v10 }
  0x1e   :  { %v76_v27 = vmul.f32 %v1212_v22, %v1212_v22  ;;  %v63_v30 = vsel %vm59_vm0, %v1212_v22, 0.0  ;;  %v99_v60 = vsel %vm59_vm0, %v78_v51, 0.0  ;;  %vm236_vm2 = vcmask 908288  }
  0x1f   :  { %v61_v29 = vsel %vm59_vm0, %v53_v23, 0.0  ;;  %v82_v33 = vcombine.high %v75_v26, %v75_v26  ;;  %v88_v35 = vsel %vm59_vm0, %v75_v26, 0.0  ;;  %v65_v36 = vsel %vm59_vm0, %v54_v24, 0.0 }
  0x20   :  { %227 = vrot.lane.b32.xlu1 %v225_v18, %s1090_s23  ;;  %v62_v32 = vadd.f32 %v61_v29, %v60_v25  ;;  %v83_v34 = vcombine.high %v76_v27, %v76_v27  ;;  %v91_v40 = vsel %vm59_vm0, %v76_v27, 0.0  ;;  %vm354_vm3 = vcmask 924672  }
  0x21   :  { %v89_v39 = vsel %vm59_vm0, %v82_v33, 0.0  ;;  %vm384_vm4 = vcmask 121856   ;;  %vm442_vm5 = vcmask 7168   ;;  %vm266_vm6 = vcmask 138240  }
  0x22   :  { %v64_v38 = vadd.f32 %v63_v30, %v62_v32  ;;  %v90_v43 = vadd.f32 %v89_v39, %v88_v35  ;;  %v93_v47 = vsel %vm59_vm0, %v83_v34, 0.0  ;;  %v109_v32 = vld [vmem:[%s1640_s1] sm:$0xf]  ;;  %vm303_vm7 = vcmask 130048  }
  0x23   :  { %v113_v35 = vld [vmem:[%s1641_s2] sm:$0xf]  ;;  %s1097_s2 = smov 16   ;;  %vm605_vm8 = vcmask 916480   ;;  %vm709_vm9 = vcmask 293888   ;;  %vm1100_vm10 = vmmov 0  }
  0x24   :  { %345 = vrot.lane.b32.xlu1 %v343_v28, %s1091_s24  ;;  %v66_v45 = vadd.f32 %v65_v36, %v64_v38  ;;  %v92_v49 = vadd.f32 %v91_v40, %v90_v43  ;;  %v1096_v38 = vmov 839922192   ;;  %v116_v43 = vld [vmem:[%s1644_s5] ss:$4 sm:$0xff]  ;;  %s1098_s5 = smov 112  }
  0x25   :  { %v122_v39 = vunpack.c.l.s4 %v1096_v38  ;;  %v165_v51 = vrot.slane %v116_v43, %v1156_v3 }
  0x26   :  { %v68_v50 = vadd.f32 %v67_v42, %v66_v45  ;;  %v94_v55 = vadd.f32 %v93_v47, %v92_v49  ;;  %v176_v45 = vsub.s32 5, %v1153_v2  ;;  %v173_v47 = vrot.slane %v116_v43, %v1257_v63 }
  0x27   :  { %v123_v40 = vunpack.c.0.s8 %v122_v39  ;;  %v157_v49 = vrot.slane %v116_v43, %v1162_v5 }
  0x28   :  { %229 = vrot.lane.b32.xlu1 %v1200_v16, %s1090_s23  ;;  %v70_v56 = vadd.f32 %v69_v48, %v68_v50  ;;  %v96_v58 = vadd.f32 %v95_v52, %v94_v55  ;;  %v161_v50 = vrot.slane %v116_v43, %v1172_v9  ;;  %v169_v52 = vrot.slane %v116_v43, %v1159_v4 }
  0x29   :  { %v126_v42 = vsub.s32 %v123_v40, %v1153_v2 }
  0x2a   :  { %v72_v59 = vadd.f32 %v71_v54, %v70_v56  ;;  %v98_v61 = vadd.f32 %v97_v57, %v96_v58  ;;  %v180_v54 = vsub.s32 6, %v1153_v2  ;;  %v184_v3 = vcombine.low %v165_v51, %v169_v52 }
  0x2c   :  { %347 = vrot.lane.b32.xlu1 %v344_v53, %s1091_s24  ;;  %73 = vadd.xlane.f32.xlu0 %v72_v59  ;;  %v100_v62 = vadd.f32 %v99_v60, %v98_v61  ;;  %v181_v9 = vrot.slane %v116_v43, %v180_v54  ;;  %v183_v61 = vcombine.low %v157_v49, %v161_v50 }
  0x30   :  { %475 = vrot.lane.b32.xlu1 %v343_v28, %s1092_s25  ;;  %101 = vadd.xlane.f32.xlu0 %v100_v62 }
  0x34   :  { %531 = vrot.lane.b32.xlu1 %v225_v18, %s1093_s26 }
  0x38   :  { %407 = vrot.lane.b32.xlu1 %v224_v0, %s1089_s22 }
  0x3c   :  { %349 = vrot.lane.b32.xlu1 %v342_v6, %s1091_s24 }
  0x46   :  { %403 = vrot.lane.b32.xlu0 %v225_v18, %s1089_s22 }
  0x4a   :  { %477 = vrot.lane.b32.xlu0 %v344_v53, %s1092_s25 }
  0x4e   :  { %533 = vrot.lane.b32.xlu0 %v1200_v16, %s1093_s26 }
  0x52   :  { %231 = vrot.lane.b32.xlu0 %v224_v0, %s1090_s23 }
  0x56   :  { %624 = vrot.lane.b32.xlu0 %v343_v28, %s1095_s27 }
  0x5a   :  { %479 = vrot.lane.b32.xlu0 %v342_v6, %s1092_s25 }
  0x5e   :  { %628 = vrot.lane.b32.xlu0 %v342_v6, %s1095_s27 }
  0x8e   :  { %v1274_v8 = vpop.permute.xlu1 %405 }
  0x8f   :  { %v410_v18 = vrot.slane %v1274_v8, 4 }
  0x92   :  { %v1276_v11 = vpop.permute.xlu1 %227 }
  0x93   :  { %v233_v6 = vrot.slane %v1276_v11, 4 }
  0x96   :  { %v1278_v12 = vpop.permute.xlu1 %345 }
  0x9a   :  { %v1280_v13 = vpop.permute.xlu1 %229 }
  0x9b   :  { %v234_v55 = vrot.slane %v1280_v13, 4 }
  0x9e   :  { %v1282_v14 = vpop.permute.xlu1 %347 }
  0xa2   :  { %v1284_v15 = vpop.permute.xlu1 %475 }
  0xa6   :  { %v1286_v16 = vpop.permute.xlu1 %531 }
  0xa7   :  { %v537_v40 = vrot.slane %v1286_v16, 4 }
  0xaa   :  { %v408_v17 = vpop.permute.xlu1 %407 }
  0xab   :  { %v411_v19 = vrot.slane %v408_v17, 4 }
  0xad   :  { %v416_v20 = vsel %vm59_vm0, %v410_v18, %v411_v19 }
  0xae   :  { %v1293_v23 = vsel %vm412_vm1, %v416_v20, %v408_v17  ;;  %v1303_v41 = vpop.permute.xlu1 %349 }
  0xb9   :  { %v74_v24 = vpop.xlane.xlu0 %73 }
  0xba   :  { %v104_v25 = vmul.f32 0.001953125, %v74_v24 }
  0xbc   :  { %v106_v27 = vmul.f32 %v104_v25, %v104_v25 }
  0xbd   :  { %v102_v26 = vpop.xlane.xlu0 %101 }
  0xbe   :  { %v105_v28 = vmul.f32 0.001953125, %v102_v26 }
  0xc0   :  { %v107_v29 = vsub.f32 %v105_v28, %v106_v27  ;;  %v352_v28 = vrot.slane %v1282_v14, 4 }
  0xc2   :  { %v108_v30 = vmax.f32 %v107_v29, 0.0 }
  0xc4   :  { %v110_v31 = vadd.f32 1e-05, %v108_v30 }
  0xc6   :  { %1059 = vrsqrt.f32 %v110_v31  ;;  %v351_v31 = vrot.slane %v1278_v12, 4 }
  0xd0   :  { %v1060_v33 = vpop.eup %1059 }
  0xd1   :  { %v112_v34 = vmul.f32 %v1060_v33, %v109_v32  ;;  %v356_v32 = vsel %vm59_vm0, %v351_v31, %v352_v28 }
  0xd3   :  { %119 = vperm.xlu1 %1048, %v112_v34   ;;  %v114_v36 = vmul.f32 %v112_v34, %v104_v25  ;;  %v1331_v25 = vpop.permute.xlu0 %403 }
  0xd5   :  { %v115_v37 = vsub.f32 %v113_v35, %v114_v36  ;;  %v357_v36 = vsel %vm354_vm3, %v356_v32, %v1282_v14 }
  0xd7   :  { %135 = vperm.xlu1 %1048, %v115_v37   ;;  %v1346_v29 = vpop.permute.xlu0 %477 }
  0xdb   :  { %626 = vrot.lane.b32.xlu1 %v344_v53, %s1095_s27  ;;  %v177_v53 = vrot.slane %v116_v43, %v176_v45  ;;  %v534_v37 = vpop.permute.xlu0 %533 }
  0xdc   :  { %v538_v38 = vrot.slane %v534_v37, 4 }
  0xdd   :  { %v185_v62 = vcombine.low %v173_v47, %v177_v53  ;;  %v237_v53 = vsel %vm236_vm2, %v233_v6, %v1276_v11  ;;  %v540_v11 = vsel %vm384_vm4, %v537_v40, %v1286_v16 }
  0xde   :  { %v541_v47 = vsel %vm59_vm0, %v537_v40, %v538_v38 }
  0xdf   :  { %535 = vrot.lane.b32.xlu1 %v224_v0, %s1093_s26  ;;  %v542_v49 = vsel %vm384_vm4, %v541_v47, %v534_v37 }
 0x152   :  { %v120_v46 = vpop.permute.xlu1 %119 }
 0x153   :  { %v127_v48 = vrot.slane %v120_v46, %v126_v42 }
 0x155   :  { %v129_v56 = vmul.f32 %v127_v48, %v1210_v21  ;;  %v130_v58 = vmul.f32 %v127_v48, %v1212_v22  ;;  %v131_v59 = vmul.f32 %v1164_v7, %v127_v48  ;;  %v132_v5 = vmul.f32 %v127_v48, %v1241_v44 }
 0x156   :  { %v136_v57 = vpop.permute.xlu1 %135  ;;  %v238_v7 = vsel %vm59_vm0, %v233_v6, %v234_v55 }
 0x157   :  { %v143_v60 = vrot.slane %v136_v57, %v126_v42  ;;  %v239_v26 = vsel %vm236_vm2, %v238_v7, %v1280_v13  ;;  %v409_v42 = vrot.slane %v1331_v25, 4  ;;  %v353_v7 = vrot.slane %v1303_v41, 4 }
 0x159   :  { %v145_v4 = vadd.f32 %v143_v60, %v129_v56  ;;  %v146_v63 = vadd.f32 %v143_v60, %v130_v58  ;;  %v147_v0 = vadd.f32 %v143_v60, %v131_v59  ;;  %v148_v2 = vadd.f32 %v143_v60, %v132_v5  ;;  %v232_v56 = vpop.permute.xlu0 %231 }
 0x15a   :  { %v413_v46 = vsel %vm412_vm1, %v409_v42, %v1331_v25  ;;  %v1399_v52 = vpop.permute.xlu1 %626  ;;  %v355_v58 = vsel %vm354_vm3, %v351_v31, %v1278_v12  ;;  %v481_v59 = vrot.slane %v1284_v15, 4  ;;  %v482_v25 = vrot.slane %v1346_v29, 4 }
 0x15b   :  { %v149_v10 = vmax.f32 %v145_v4, 0.0  ;;  %v150_v21 = vmax.f32 %v146_v63, 0.0  ;;  %v151_v17 = vmax.f32 %v147_v0, 0.0  ;;  %v152_v19 = vmax.f32 %v148_v2, 0.0 }
 0x15c   :  { %v235_v4 = vrot.slane %v232_v56, 4 }
 0x15d   :  { %v1325_v22 = vmul.f32 %v183_v61, %v149_v10  ;;  %v1327_v44 = vmul.f32 %v184_v3, %v150_v21  ;;  %v1329_v20 = vmul.f32 %v185_v62, %v151_v17  ;;  %v192_v24 = vmul.f32 %v181_v9, %v152_v19  ;;  %v625_v61 = vpop.permute.xlu0 %624 }
 0x15e   :  { %v536_v5 = vpop.permute.xlu1 %535  ;;  %v414_v9 = vsel %vm59_vm0, %v409_v42, %v410_v18  ;;  %v630_v12 = vrot.slane %v625_v61, 4  ;;  %v484_v62 = vsel %vm442_vm5, %v481_v59, %v1284_v15  ;;  %v240_v6 = vsel %vm59_vm0, %v234_v55, %v235_v4 }
 0x15f   :  { %193 = vst [vmem:[#allocation2] sm:$0xff] %v1325_v22  ;;  %194 = vst [vmem:[#allocation2 + $0x8] sm:$0xff] %v1327_v44  ;;  %297 = vrot.lane.b32.xlu0 %v1327_v44, %s1097_s2  ;;  %293 = vrot.lane.b32.xlu1 %v1325_v22, %s1097_s2  ;;  %v1343_v27 = vmul.f32 %v239_v26, %v1327_v44  ;;  %v1352_v30 = vmul.f32 %v1293_v23, %v1329_v20  ;;  %v539_v16 = vrot.slane %v536_v5, 4 }
 0x160   :  { %195 = vst [vmem:[#allocation2 + $0x10] sm:$0xff] %v1329_v20  ;;  %196 = vst [vmem:[#allocation2 + $0x18] sm:$0xf] %v192_v24  ;;  %v289_v35 = vcombine.low %v1327_v44, %v1327_v44  ;;  %v1372_v39 = vmul.f32 %v357_v36, %v1327_v44  ;;  %v288_v48 = vcombine.low %v1325_v22, %v1325_v22 }
 0x161   :  { %v1394_v50 = vmul.f32 %v413_v46, %v1325_v22  ;;  %v1408_v54 = vmul.f32 %v237_v53, %v1325_v22  ;;  %v1421_v60 = vmul.f32 %v355_v58, %v1325_v22  ;;  %v415_v18 = vsel %vm412_vm1, %v414_v9, %v1274_v8 }
 0x162   :  { %v422_v0 = vmul.f32 %v415_v18, %v1327_v44  ;;  %v633_v2 = vsel %vm266_vm6, %v630_v12, %v625_v61  ;;  %v543_v15 = vsel %vm59_vm0, %v538_v38, %v539_v16  ;;  %v241_v19 = vsel %vm236_vm2, %v240_v6, %v232_v56 }
 0x163   :  { %258 = vrot.lane.b32.xlu0 %v1343_v27, %s1095_s27  ;;  %v544_v17 = vsel %vm384_vm4, %v543_v15, %v536_v5  ;;  %v247_v13 = vmul.f32 %v241_v19, %v1329_v20  ;;  %v631_v22 = vrot.slane %v1399_v52, 4  ;;  %v358_v44 = vsel %vm59_vm0, %v352_v28, %v353_v7 }
 0x164   :  { %v290_v24 = vcombine.low %v1329_v20, %v1329_v20  ;;  %v359_v32 = vsel %vm354_vm3, %v358_v44, %v1303_v41  ;;  %v485_v28 = vsel %vm59_vm0, %v481_v59, %v482_v25  ;;  %v480_v41 = vpop.permute.xlu0 %479  ;;  %v427_v37 = vcombine.low %v1394_v50, %v1394_v50 }
 0x165   :  { %v634_v31 = vsel %vm59_vm0, %v630_v12, %v631_v22  ;;  %v365_v14 = vmul.f32 %v359_v32, %v1329_v20  ;;  %v483_v38 = vrot.slane %v480_v41, 4  ;;  %v251_v46 = vcombine.high %v1408_v54, %v1408_v54 }
 0x166   :  { %v1358_v33 = vld [vmem:[#allocation2 + $0x4] sm:$0xff] }
 0x167   :  { %v1360_v34 = vld [vmem:[#allocation2 + $0xc] sm:$0xff]  ;;  %595 = vrot.lane.b32.xlu1 %v1358_v33, %s1098_s5  ;;  %467 = vst [vmem:[#allocation3 + $0x50] sm:$0xf] %v1358_v33  ;;  %v460_v23 = vld [vmem:[#allocation2 + $0x14] sm:$0xf]  ;;  %295 = vrot.lane.b32.xlu0 %v289_v35, %s1097_s2  ;;  %v463_v43 = vcombine.high %v1358_v33, %v1358_v33  ;;  %v1427_v3 = vmul.f32 %v1358_v33, %v540_v11 }
 0x168   :  { %469 = vst [vmem:[#allocation3 + $0x60] sm:$0xf] %v1360_v34  ;;  %471 = vst [vmem:[#allocation3 + $0x70] sm:$0xf] %v460_v23  ;;  %v464_v45 = vcombine.high %v1360_v34, %v1360_v34  ;;  %v1397_v51 = vmul.f32 %v1360_v34, %v542_v49  ;;  %v591_v57 = vcombine.low %v1360_v34, %v1360_v34  ;;  %v1452_v21 = vld [vmem:[#allocation2 + $0x14] sm:$0xff] }
 0x169   :  { %468 = vst [vmem:[#allocation3 + $0x58] sm:$0xf] %v463_v43  ;;  %v1436_v63 = vmul.f32 %v1358_v33, %v484_v62  ;;  %v590_v10 = vcombine.low %v1358_v33, %v1358_v33  ;;  %v641_v8 = vmul.f32 %v633_v2, %v1358_v33  ;;  %v550_v55 = vmul.f32 %v544_v17, %v1452_v21 }
 0x16a   :  { %470 = vst [vmem:[#allocation3 + $0x68] sm:$0xf] %v464_v45  ;;  %v592_v26 = vcombine.low %v1452_v21, %v1452_v21  ;;  %v635_v33 = vsel %vm266_vm6, %v634_v31, %v1399_v52  ;;  %v428_v35 = vcombine.low %v422_v0, %v422_v0  ;;  %v486_v23 = vsel %vm442_vm5, %v485_v28, %v1346_v29 }
 0x16b   :  { %301 = vrot.lane.b32.xlu1 %v1329_v20, %s1097_s2  ;;  %376 = vrot.lane.b32.xlu0 %v1372_v39, %s1093_s26  ;;  %v642_v36 = vmul.f32 %v635_v33, %v1360_v34  ;;  %v493_v20 = vmul.f32 %v1360_v34, %v486_v23  ;;  %v487_v42 = vsel %vm59_vm0, %v482_v25, %v483_v38 }
 0x16c   :  { %v488_v29 = vsel %vm442_vm5, %v487_v42, %v480_v41  ;;  %v252_v43 = vcombine.high %v1343_v27, %v1343_v27  ;;  %v370_v45 = vcombine.high %v1372_v39, %v1372_v39  ;;  %v647_v47 = vcombine.high %v641_v8, %v641_v8  ;;  %v629_v39 = vpop.permute.xlu0 %628 }
 0x16d   :  { %v499_v40 = vcombine.low %v493_v20, %v493_v20  ;;  %v369_v27 = vcombine.high %v1421_v60, %v1421_v60  ;;  %v554_v49 = vcombine.high %v1427_v3, %v1427_v3  ;;  %v632_v52 = vrot.slane %v629_v39, 4 }
 0x16e   :  { %v498_v53 = vcombine.low %v1436_v63, %v1436_v63  ;;  %v556_v58 = vcombine.high %v550_v55, %v550_v55  ;;  %v555_v11 = vcombine.high %v1397_v51, %v1397_v51 }
 0x16f   :  { %599 = vrot.lane.b32.xlu1 %v1360_v34, %s1098_s5  ;;  %291 = vrot.lane.b32.xlu0 %v288_v48, %s1097_s2  ;;  %v494_v34 = vmul.f32 %v488_v29, %v1452_v21  ;;  %v253_v48 = vcombine.high %v247_v13, %v247_v13  ;;  %v636_v56 = vsel %vm59_vm0, %v631_v22, %v632_v52 }
 0x170   :  { %v637_v59 = vsel %vm266_vm6, %v636_v56, %v629_v39 }
 0x171   :  { %v643_v5 = vmul.f32 %v637_v59, %v1452_v21 }
 0x173   :  { %432 = vrot.lane.b32.xlu1 %v1394_v50, %s1092_s25  ;;  %561 = vrot.lane.b32.xlu0 %v1397_v51, %s1091_s24  ;;  %v371_v50 = vcombine.high %v365_v14, %v365_v14  ;;  %v649_v9 = vcombine.high %v643_v5, %v643_v5 }
 0x177   :  { %254 = vrot.lane.b32.xlu1 %v1408_v54, %s1095_s27  ;;  %597 = vrot.lane.b32.xlu0 %v591_v57, %s1098_s5  ;;  %v500_v54 = vcombine.low %v494_v34, %v494_v34  ;;  %v429_v57 = vcombine.low %v1352_v30, %v1352_v30 }
 0x17b   :  { %372 = vrot.lane.b32.xlu1 %v1421_v60, %s1093_s26  ;;  %557 = vrot.lane.b32.xlu0 %v1427_v3, %s1091_s24  ;;  %v648_v60 = vcombine.high %v642_v36, %v642_v36 }
 0x17f   :  { %503 = vrot.lane.b32.xlu1 %v1436_v63, %s1089_s22  ;;  %436 = vrot.lane.b32.xlu0 %v422_v0, %s1092_s25 }
 0x183   :  { %593 = vrot.lane.b32.xlu1 %v590_v10, %s1098_s5  ;;  %650 = vrot.lane.b32.xlu0 %v641_v8, %s1090_s23 }
 0x187   :  { %262 = vrot.lane.b32.xlu1 %v247_v13, %s1095_s27  ;;  %565 = vrot.lane.b32.xlu0 %v550_v55, %s1091_s24 }
 0x18b   :  { %299 = vrot.lane.b32.xlu1 %v290_v24, %s1097_s2  ;;  %601 = vrot.lane.b32.xlu0 %v592_v26, %s1098_s5 }
 0x18f   :  { %380 = vrot.lane.b32.xlu1 %v365_v14, %s1093_s26  ;;  %434 = vrot.lane.b32.xlu0 %v428_v35, %s1092_s25 }
 0x193   :  { %654 = vrot.lane.b32.xlu1 %v642_v36, %s1090_s23  ;;  %430 = vrot.lane.b32.xlu0 %v427_v37, %s1092_s25 }
 0x197   :  { %440 = vrot.lane.b32.xlu1 %v1352_v30, %s1092_s25  ;;  %505 = vrot.lane.b32.xlu0 %v499_v40, %s1089_s22  ;;  %v703_v30 = vld [vmem:[%s1643_s4] sm:$0xff] }
 0x19b   :  { %507 = vrot.lane.b32.xlu1 %v493_v20, %s1089_s22  ;;  %260 = vrot.lane.b32.xlu0 %v252_v43, %s1095_s27 }
 0x19f   :  { %511 = vrot.lane.b32.xlu1 %v494_v34, %s1089_s22  ;;  %378 = vrot.lane.b32.xlu0 %v370_v45, %s1093_s26 }
 0x1a3   :  { %256 = vrot.lane.b32.xlu1 %v251_v46, %s1095_s27  ;;  %652 = vrot.lane.b32.xlu0 %v647_v47, %s1090_s23 }
 0x1a7   :  { %374 = vrot.lane.b32.xlu1 %v369_v27, %s1093_s26  ;;  %264 = vrot.lane.b32.xlu0 %v253_v48, %s1095_s27 }
 0x1ab   :  { %559 = vrot.lane.b32.xlu1 %v554_v49, %s1091_s24  ;;  %382 = vrot.lane.b32.xlu0 %v371_v50, %s1093_s26 }
 0x1af   :  { %501 = vrot.lane.b32.xlu1 %v498_v53, %s1089_s22  ;;  %509 = vrot.lane.b32.xlu0 %v500_v54, %s1089_s22 }
 0x1b3   :  { %438 = vrot.lane.b32.xlu1 %v429_v57, %s1092_s25  ;;  %567 = vrot.lane.b32.xlu0 %v556_v58, %s1091_s24 }
 0x1b7   :  { %563 = vrot.lane.b32.xlu1 %v555_v11, %s1091_s24  ;;  %656 = vrot.lane.b32.xlu0 %v648_v60, %s1090_s23 }
 0x1bb   :  { %603 = vrot.lane.b32.xlu1 %v1452_v21, %s1098_s5  ;;  %660 = vrot.lane.b32.xlu0 %v649_v9, %s1090_s23 }
 0x1bf   :  { %658 = vrot.lane.b32.xlu1 %v643_v5, %s1090_s23 }
 0x1c3   :  { %706 = vperm.xlu1 %1048, %v703_v30  }
 0x1d1   :  { %v298_v51 = vpop.permute.xlu0 %297  ;;  %v294_v61 = vpop.permute.xlu1 %293 }
 0x1d5   :  { %v1539_v3 = vpop.permute.xlu0 %258 }
 0x1d9   :  { %v596_v12 = vpop.permute.xlu1 %595  ;;  %v296_v62 = vpop.permute.xlu0 %295 }
 0x1da   :  { %v305_v16 = vsel %vm303_vm7, %v294_v61, %v296_v62  ;;  %v306_v4 = vsel %vm303_vm7, %v296_v62, %v298_v51 }
 0x1db   :  { %315 = vst [vmem:[#allocation3 + $0x8] sm:$0xf0] %v305_v16  ;;  %316 = vst [vmem:[#allocation3 + $0x10] sm:$0xf0] %v306_v4 }
 0x1dd   :  { %v302_v63 = vpop.permute.xlu1 %301  ;;  %v1543_v18 = vpop.permute.xlu0 %376 }
 0x1e1   :  { %v600_v0 = vpop.permute.xlu1 %599  ;;  %v292_v2 = vpop.permute.xlu0 %291 }
 0x1e2   :  { %v304_v15 = vsel %vm303_vm7, %v292_v2, %v294_v61 }
 0x1e3   :  { %314 = vst [vmem:[#allocation3] sm:$0xf0] %v304_v15 }
 0x1e5   :  { %v433_v6 = vpop.permute.xlu1 %432  ;;  %v1546_v10 = vpop.permute.xlu0 %561 }
 0x1e9   :  { %v255_v8 = vpop.permute.xlu1 %254  ;;  %v598_v21 = vpop.permute.xlu0 %597 }
 0x1ea   :  { %v607_v17 = vsel %vm605_vm8, %v596_v12, %v598_v21  ;;  %v608_v19 = vsel %vm605_vm8, %v598_v21, %v600_v0 }
 0x1eb   :  { %617 = vst [vmem:[#allocation3 + $0x80] sm:$0xf0] %v607_v17  ;;  %618 = vst [vmem:[#allocation3 + $0x88] sm:$0xf0] %v608_v19 }
 0x1ed   :  { %v373_v7 = vpop.permute.xlu1 %372  ;;  %v1550_v13 = vpop.permute.xlu0 %557 }
 0x1f1   :  { %v1552_v55 = vpop.permute.xlu1 %503  ;;  %v1554_v22 = vpop.permute.xlu0 %436 }
 0x1f5   :  { %v594_v44 = vpop.permute.xlu1 %593  ;;  %v651_v25 = vpop.permute.xlu0 %650 }
 0x1f6   :  { %v606_v24 = vsel %vm605_vm8, %v594_v44, %v596_v12 }
 0x1f7   :  { %616 = vst [vmem:[#allocation3 + $0x78] sm:$0xf0] %v606_v24 }
 0x1f9   :  { %v263_v26 = vpop.permute.xlu1 %262  ;;  %v1557_v31 = vpop.permute.xlu0 %565 }
 0x1fd   :  { %v300_v32 = vpop.permute.xlu1 %299  ;;  %v1561_v33 = vpop.permute.xlu0 %601 }
 0x1fe   :  { %v307_v14 = vsel %vm303_vm7, %v298_v51, %v300_v32  ;;  %v308_v28 = vsel %vm303_vm7, %v300_v32, %v302_v63  ;;  %v609_v35 = vsel %vm605_vm8, %v600_v0, %v1561_v33 }
 0x1ff   :  { %317 = vst [vmem:[#allocation3 + $0x18] sm:$0xf0] %v307_v14  ;;  %318 = vst [vmem:[#allocation3 + $0x20] sm:$0xf0] %v308_v28 }
 0x200   :  { %619 = vst [vmem:[#allocation3 + $0x90] sm:$0xf0] %v609_v35 }
 0x201   :  { %v381_v23 = vpop.permute.xlu1 %380  ;;  %v435_v36 = vpop.permute.xlu0 %434 }
 0x202   :  { %v444_v41 = vsel %vm442_vm5, %v433_v6, %v435_v36  ;;  %v445_v37 = vsel %vm442_vm5, %v435_v36, %v1554_v22 }
 0x203   :  { %454 = vst [vmem:[#allocation3 + $0x30] sm:$0xf0] %v444_v41  ;;  %455 = vst [vmem:[#allocation3 + $0x38] sm:$0xf0] %v445_v37 }
 0x205   :  { %v1568_v20 = vpop.permute.xlu1 %654  ;;  %v431_v38 = vpop.permute.xlu0 %430 }
 0x206   :  { %v443_v40 = vsel %vm442_vm5, %v431_v38, %v433_v6 }
 0x207   :  { %453 = vst [vmem:[#allocation3 + $0x28] sm:$0xf0] %v443_v40 }
 0x209   :  { %v441_v42 = vpop.permute.xlu1 %440  ;;  %v506_v29 = vpop.permute.xlu0 %505 }
 0x20a   :  { %v514_v43 = vsel %vm412_vm1, %v1552_v55, %v506_v29 }
 0x20b   :  { %524 = vst [vmem:[#allocation3 + $0x58] sm:$0xf0] %v514_v43 }
 0x20d   :  { %v508_v34 = vpop.permute.xlu1 %507  ;;  %v261_v46 = vpop.permute.xlu0 %260 }
 0x20e   :  { %v515_v45 = vsel %vm412_vm1, %v506_v29, %v508_v34  ;;  %v269_v47 = vsel %vm266_vm6, %v1539_v3, %v261_v46  ;;  %v270_v27 = vsel %vm266_vm6, %v261_v46, %v263_v26  ;;  %v677_v29 = vld [vmem:[%s1642_s3] sm:$0xff] }
 0x20f   :  { %525 = vst [vmem:[#allocation3 + $0x60] sm:$0xf0] %v515_v45  ;;  %279 = vst [vmem:[#allocation3 + $0x10] sm:$0xf] %v269_v47 }
 0x210   :  { %280 = vst [vmem:[#allocation3 + $0x18] sm:$0xf] %v270_v27 }
 0x211   :  { %v512_v48 = vpop.permute.xlu1 %511  ;;  %v379_v39 = vpop.permute.xlu0 %378 }
 0x212   :  { %v387_v49 = vsel %vm384_vm4, %v1543_v18, %v379_v39  ;;  %v388_v50 = vsel %vm384_vm4, %v379_v39, %v381_v23 }
 0x213   :  { %397 = vst [vmem:[#allocation3 + $0x38] sm:$0xf] %v387_v49  ;;  %398 = vst [vmem:[#allocation3 + $0x40] sm:$0xf] %v388_v50 }
 0x215   :  { %v257_v52 = vpop.permute.xlu1 %256  ;;  %v653_v56 = vpop.permute.xlu0 %652 }
 0x216   :  { %v267_v53 = vsel %vm266_vm6, %v255_v8, %v257_v52  ;;  %v268_v54 = vsel %vm266_vm6, %v257_v52, %v1539_v3  ;;  %v662_v57 = vsel %vm236_vm2, %v651_v25, %v653_v56  ;;  %v663_v58 = vsel %vm236_vm2, %v653_v56, %v1568_v20  ;;  %v690_v27 = vld [vmem:[#allocation3 + $0x60] sm:$0xff] }
 0x217   :  { %277 = vst [vmem:[#allocation3] sm:$0xf] %v267_v53  ;;  %278 = vst [vmem:[#allocation3 + $0x8] sm:$0xf] %v268_v54  ;;  %v1099_v54 = vmov 0.0|0.0  }
 0x218   :  { %672 = vst [vmem:[#allocation3 + $0xa0] sm:$0xf] %v662_v57  ;;  %673 = vst [vmem:[#allocation3 + $0xa8] sm:$0xf] %v663_v58 }
 0x219   :  { %v375_v59 = vpop.permute.xlu1 %374  ;;  %v265_v60 = vpop.permute.xlu0 %264 }
 0x21a   :  { %v385_v11 = vsel %vm384_vm4, %v373_v7, %v375_v59  ;;  %v386_v5 = vsel %vm384_vm4, %v375_v59, %v1543_v18  ;;  %v271_v9 = vsel %vm266_vm6, %v263_v26, %v265_v60  ;;  %v685_v38 = vld [vmem:[#allocation3 + $0x38] sm:$0xff] }
 0x21b   :  { %395 = vst [vmem:[#allocation3 + $0x28] sm:$0xf] %v385_v11  ;;  %396 = vst [vmem:[#allocation3 + $0x30] sm:$0xf] %v386_v5 }
 0x21c   :  { %281 = vst [vmem:[#allocation3 + $0x20] sm:$0xf] %v271_v9 }
 0x21d   :  { %v560_v30 = vpop.permute.xlu1 %559  ;;  %v383_v3 = vpop.permute.xlu0 %382 }
 0x21e   :  { %v569_v51 = vsel %vm354_vm3, %v1550_v13, %v560_v30  ;;  %v570_v61 = vsel %vm354_vm3, %v560_v30, %v1546_v10  ;;  %v389_v12 = vsel %vm384_vm4, %v381_v23, %v383_v3  ;;  %v679_v16 = vld [vmem:[#allocation3 + $0x8] sm:$0xff]  ;;  %v678_v0 = vld [vmem:[#allocation3] sm:$0xff]  ;;  %v689_v13 = vld [vmem:[#allocation3 + $0x58] sm:$0xff] }
 0x21f   :  { %579 = vst [vmem:[#allocation3 + $0x78] sm:$0xf] %v569_v51  ;;  %580 = vst [vmem:[#allocation3 + $0x80] sm:$0xf] %v570_v61  ;;  %v699_v37 = vld [vmem:[#allocation3 + $0xa8] sm:$0xf] }
 0x220   :  { %399 = vst [vmem:[#allocation3 + $0x48] sm:$0xf] %v389_v12 }
 0x221   :  { %v502_v62 = vpop.permute.xlu1 %501  ;;  %v510_v18 = vpop.permute.xlu0 %509 }
 0x222   :  { %v513_v4 = vsel %vm412_vm1, %v502_v62, %v1552_v55  ;;  %v684_v63 = vld [vmem:[#allocation3 + $0x30] sm:$0xff]  ;;  %v683_v2 = vld [vmem:[#allocation3 + $0x28] sm:$0xff]  ;;  %v516_v6 = vsel %vm412_vm1, %v508_v34, %v510_v18  ;;  %v517_v8 = vsel %vm412_vm1, %v510_v18, %v512_v48  ;;  %v698_v34 = vld [vmem:[#allocation3 + $0xa0] sm:$0xf] }
 0x223   :  { %523 = vst [vmem:[#allocation3 + $0x50] sm:$0xf0] %v513_v4  ;;  %v1010_v15 = vpack.c.bf16 %v684_v63, %v679_v16  ;;  %v1012_v21 = vpack.c.bf16 %v683_v2, %v678_v0  ;;  %526 = vst [vmem:[#allocation3 + $0x68] sm:$0xf0] %v516_v6  ;;  %v682_v47 = vld [vmem:[#allocation3 + $0x20] sm:$0xff] }
 0x224   :  { %527 = vst [vmem:[#allocation3 + $0x70] sm:$0xf0] %v517_v8 }
 0x225   :  { %v439_v17 = vpop.permute.xlu1 %438  ;;  %1011 = vmatprep.subr.bf16.mxu0 %v1010_v15  ;;  %v568_v44 = vpop.permute.xlu0 %567 }
 0x226   :  { %v446_v19 = vsel %vm442_vm5, %v1554_v22, %v439_v17  ;;  %v447_v7 = vsel %vm442_vm5, %v439_v17, %v441_v42  ;;  %1013 = vmatpush1.bf16.msra.mxu0 %v1012_v21  ;;  %v694_v55 = vld [vmem:[#allocation3 + $0x80] sm:$0xff]  ;;  %v573_v25 = vsel %vm354_vm3, %v1557_v31, %v568_v44  ;;  %v693_v28 = vld [vmem:[#allocation3 + $0x78] sm:$0xff] }
 0x227   :  { %456 = vst [vmem:[#allocation3 + $0x40] sm:$0xf0] %v446_v19  ;;  %457 = vst [vmem:[#allocation3 + $0x48] sm:$0xf0] %v447_v7  ;;  %v1014_v24 = vpack.c.bf16 %v694_v55, %v689_v13 }
 0x228   :  { %583 = vst [vmem:[#allocation3 + $0x98] sm:$0xf] %v573_v25 }
 0x229   :  { %v564_v26 = vpop.permute.xlu1 %563  ;;  %1015 = vmatprep.subr.bf16.mxu0 %v1014_v24  ;;  %v657_v35 = vpop.permute.xlu0 %656 }
 0x22a   :  { %v571_v32 = vsel %vm354_vm3, %v1546_v10, %v564_v26  ;;  %v572_v22 = vsel %vm354_vm3, %v564_v26, %v1557_v31  ;;  %v688_v14 = vld [vmem:[#allocation3 + $0x50] sm:$0xff]  ;;  %v664_v36 = vsel %vm236_vm2, %v1568_v20, %v657_v35  ;;  %v681_v31 = vld [vmem:[#allocation3 + $0x18] sm:$0xff]  ;;  %v691_v50 = vld [vmem:[#allocation3 + $0x68] sm:$0xff] }
 0x22b   :  { %581 = vst [vmem:[#allocation3 + $0x88] sm:$0xf] %v571_v32  ;;  %582 = vst [vmem:[#allocation3 + $0x90] sm:$0xf] %v572_v22  ;;  %v1016_v23 = vpack.c.bf16 %v693_v28, %v688_v14  ;;  %v680_v20 = vld [vmem:[#allocation3 + $0x10] sm:$0xff] }
 0x22c   :  { %674 = vst [vmem:[#allocation3 + $0xb0] sm:$0xf] %v664_v36  ;;  %v1020_v45 = vpack.c.bf16 %v685_v38, %v680_v20  ;;  %v692_v58 = vld [vmem:[#allocation3 + $0x70] sm:$0xff] }
 0x22d   :  { %v604_v41 = vpop.permute.xlu1 %603  ;;  %1017 = vmatpush1.bf16.msra.mxu0 %v1016_v23 }
 0x22e   :  { %v610_v10 = vsel %vm605_vm8, %v1561_v33, %v604_v41  ;;  %979 = vmatprep.subr.msk.mxu0 %vm59_vm0, %v699_v37  ;;  %v686_v40 = vld [vmem:[#allocation3 + $0x40] sm:$0xff]  ;;  %v687_v43 = vld [vmem:[#allocation3 + $0x48] sm:$0xff]  ;;  %v661_v33 = vpop.permute.xlu0 %660 }
 0x22f   :  { %620 = vst [vmem:[#allocation3 + $0x98] sm:$0xf0] %v610_v10  ;;  %v1018_v42 = vpack.c.bf16 %v686_v40, %v681_v31  ;;  %v1027_v49 = vpack.c.bf16 %v687_v43, %v682_v47 }
 0x231   :  { %v659_v46 = vpop.permute.xlu1 %658  ;;  %980 = vmatpush1.msk.msra.mxu0 %vm59_vm0, %v698_v34  ;;  %1019 = vmatprep.subr.bf16.mxu1 %v1018_v42 }
 0x232   :  { %v665_v48 = vsel %vm236_vm2, %v657_v35, %v659_v46  ;;  %v666_v39 = vsel %vm236_vm2, %v659_v46, %v661_v33  ;;  %981 = vmatmul.mubr.msk.f32.vlgmr.msra.gmra.mrb[0].mxu0 %vm709_vm9, %v677_v29  ;;  %1021 = vmatpush1.bf16.msra.mxu1 %v1020_v45  ;;  %v696_v52 = vld [vmem:[#allocation3 + $0x90] sm:$0xff]  ;;  %v695_v53 = vld [vmem:[#allocation3 + $0x88] sm:$0xff] }
 0x233   :  { %675 = vst [vmem:[#allocation3 + $0xb8] sm:$0xf] %v665_v48  ;;  %676 = vst [vmem:[#allocation3 + $0xc0] sm:$0xf] %v666_v39  ;;  %1026 = vmatprep.subr.bf16.mxu0 %v1099_v54  ;;  %v1022_v56 = vpack.c.bf16 %v696_v52, %v691_v50  ;;  %v1024_v57 = vpack.c.bf16 %v695_v53, %v690_v27  ;;  %1007 = vmatprep.mubr.msk.f32.mxu0 %vm1100_vm10, %v1088_v1  ;;  %v700_v60 = vld [vmem:[#allocation3 + $0xb0] sm:$0xf] }
 0x234   :  { %1028 = vmatpush3.bf16.msra.mxu0 %v1027_v49 }
 0x235   :  { %1023 = vmatprep.subr.bf16.mxu1 %v1022_v56  ;;  %1029 = vmatprep.subr.bf16.mxu0 %v1099_v54 }
 0x236   :  { %1025 = vmatpush1.bf16.msra.mxu1 %v1024_v57  ;;  %v697_v59 = vld [vmem:[#allocation3 + $0x98] sm:$0xff] }
 0x237   :  { %v1030_v11 = vpack.c.bf16 %v697_v59, %v692_v58 }
 0x239   :  { %1031 = vmatpush3.bf16.msra.mxu0 %v1030_v11 }
 0x23a   :  { %v701_v5 = vld [vmem:[#allocation3 + $0xb8] sm:$0xf]  ;;  %1005 = vmatprep.subr.mxu0 %v1088_v1  ;;  %v702_v9 = vld [vmem:[#allocation3 + $0xc0] sm:$0xf] }
 0x23b   :  { %982 = vmatprep.subr.msk.mxu1 %vm59_vm0, %v701_v5 }
 0x23c   :  { %983 = vmatpush1.msk.msra.mxu1 %vm59_vm0, %v700_v60 }
 0x23d   :  { %984 = vmatmul.mubr.msk.f32.vlgmr.msra.gmra.mrb[0].mxu1 %vm709_vm9, %v677_v29  ;;  %1006 = vmatpush3.msk.msra.mxu0 %vm59_vm0, %v702_v9 }
 0x23e   :  { %1008 = vmatmul.mubr.msk.f32.vlgmr.msra.gmra.mrb[2].mxu0 %vm709_vm9, %v677_v29 }
 0x242   :  { %v707_v30 = vpop.permute.xlu1 %706 }
 0x305   :  { %v794_v51 = vpop.f32.mrb[0].mxu0 }
 0x306   :  { %v795_v61 = vadd.f32 %v794_v51, %v707_v30  ;;  %v796_v3 = vpop.f32.mrb[1].mxu0 }
 0x307   :  { %v797_v12 = vadd.f32 %v796_v3, %v707_v30 }
 0x308   :  { %v953_v62 = vrot.slane %v795_v61, 4 }
 0x309   :  { %v954_v16 = vrot.slane %v797_v12, 4 }
 0x30a   :  { %957 = vst [vmem:[%s1645_s6 + $0x10] ss:$-12 sps:$4 sm:$0xff] %v953_v62  }
 0x30b   :  { %958 = vst [vmem:[%s1645_s6 + $0x18] ss:$-12 sps:$4 sm:$0xff] %v954_v16  }
 0x310   :  { %v865_v1 = vpop.f32.mrb[0].mxu1 }
 0x311   :  { %v866_v4 = vpop.f32.mrb[1].mxu1  ;;  %v935_v63 = vpop.f32.mrb[2].mxu0 }
 0x312   :  { %v867_v18 = vadd.f32 %v866_v4, %v707_v30  ;;  %v936_v0 = vadd.f32 %v935_v63, %v707_v30  ;;  %v1009_v2 = vpop.f32.mrb[3].mxu0 }
 0x314   :  { %v963_v15 = vrot.slane %v867_v18, 4  ;;  %v964_v6 = vrot.slane %v936_v0, 4 }
 0x316   :  { %987 = vst [vmem:[%s1645_s6 + $0x30] ss:$-12 sps:$4 sm:$0xff] %v963_v15   ;;  %988 = vst [vmem:[%s1645_s6 + $0x38] ss:$-12 sps:$4 sm:$0xff] %v964_v6  }
 0x317   :  { %976 = vsyncpa [#allocation5], 1 }

</bundles_post_ra>
